<compile_context>
chip_gen: v7x
topology: tpu7x:2x2x1
jax: 0.10.0
libtpu: 0.0.40
codegen_flags: <defaults>
</compile_context>

<pallas_src>
import math

import jax
import jax.numpy as jnp
from jax.experimental import pallas as pl
from jax.experimental.pallas import tpu as pltpu


def _mlp_kernel(x_ref, w1_ref, b1_ref, w2_ref, b2_ref, o_ref):
    # x tile: (tm, D_in); weights/biases are resident across all grid steps.
    # fc1 on the MXU, f32 accumulate (inputs may be f32 or bf16).
    h = jnp.dot(x_ref[...], w1_ref[...], preferred_element_type=jnp.float32)
    # bias + ReLU on the VPU.
    h = jnp.maximum(h + b1_ref[...], 0.0)                      # (tm, H) f32
    # fc2 (out_features == 1): 1-row matmul of w2 (1, H) against h (tm, H)
    # contracting over H -> lane-dense (1, tm) row.  This replaces the
    # (tm, 1) column (which would cost ~tm/8 masked partial stores per tile
    # and ~128x lane-padded output buffers).
    out_row = jax.lax.dot_general(
        w2_ref[...], h,
        dimension_numbers=(((1,), (1,)), ((), ())),
        preferred_element_type=jnp.float32)                    # (1, tm)
    o_ref[...] = (out_row + b2_ref[0]).astype(o_ref.dtype)


def _round_up(n: int, m: int) -> int:
    return ((n + m - 1) // m) * m


def two_layer_regression(x, w1, b1, w2, b2, *,
                         block_rows: int = 8192,
                         vmem_limit_bytes: int = 48 * 1024 * 1024,
                         use_bf16: bool = False):
    """out[b, 0] = fc2(relu(fc1(x[b])))  — matches the torch module exactly
    (use_bf16=True trades exact f32 parity for half the x HBM stream)."""
    B, D_in = x.shape
    H = w1.shape[1]

    # Tile the batch.  When the grid has more than one step, tm is a multiple
    # of 128 (lane-dense output stores, sublane-aligned x blocks); for small B
    # the whole (8-row-rounded) batch goes in one tile and the block equals
    # the full output row, which also satisfies the (8, 128) block rules.
    tm = min(_round_up(block_rows, 128), _round_up(B, 8))
    num_tiles = pl.cdiv(B, tm)

    if use_bf16:
        x_in = x.astype(jnp.bfloat16)
        w1_in = w1.astype(jnp.bfloat16)
    else:
        x_in, w1_in = x, w1

    out_row = pl.pallas_call(
        _mlp_kernel,
        out_shape=jax.ShapeDtypeStruct((1, num_tiles * tm), jnp.float32),
        grid_spec=pltpu.PrefetchScalarGridSpec(
            num_scalar_prefetch=0,
            grid=(num_tiles,),
            in_specs=[
                # x streamed over the batch grid axis (double-buffered DMA).
                # The ragged last block (when tm does not divide B) is padded
                # by Pallas on read; its junk outputs are sliced off below.
                pl.BlockSpec((tm, D_in), lambda i: (i, 0)),
                # Resident weights / bias (invariant index_map -> DMA'd once).
                pl.BlockSpec((D_in, H), lambda i: (0, 0)),
                pl.BlockSpec((1, H), lambda i: (0, 0)),
                pl.BlockSpec((1, H), lambda i: (0, 0)),
                # Scalar output bias in SMEM (no padded VMEM tile / per-step DMA).
                pl.BlockSpec(memory_space=pltpu.MemorySpace.SMEM),
            ],
            # Lane-dense output: one (1, tm) row per tile, packed side by side.
            out_specs=pl.BlockSpec((1, tm), lambda i: (0, i)),
        ),
        compiler_params=pltpu.CompilerParams(
            # Disjoint output tiles, no carried state -> safe to shard across
            # TensorCores (2x on v7x, neutral on v5e/v6e).
            dimension_semantics=("parallel",),
            # ~16 MiB used at tm=8192 (lane-padded x double-buffer + h); 48 MiB
            # leaves headroom and still fits v7x's 64 MiB physical VMEM.
            vmem_limit_bytes=vmem_limit_bytes,
        ),
    )(x_in, w1_in, b1, w2, b2)

    # (1, num_tiles*tm) row -> (B, 1) column; drops the ragged-tail junk.
    return out_row[0, :B].reshape(B, 1)


def init_params(key, input_dim, hidden_dim):
    # Deterministic init mimicking nn.Linear's default (uniform +-1/sqrt(fan_in)).
    k1, k2, k3, k4 = jax.random.split(key, 4)
    bound1 = 1.0 / math.sqrt(input_dim)
    bound2 = 1.0 / math.sqrt(hidden_dim)
    w1 = jax.random.uniform(k1, (input_dim, hidden_dim), jnp.float32,
                            minval=-bound1, maxval=bound1)
    b1 = jax.random.uniform(k2, (1, hidden_dim), jnp.float32,
                            minval=-bound1, maxval=bound1)
    w2 = jax.random.uniform(k3, (1, hidden_dim), jnp.float32,
                            minval=-bound2, maxval=bound2)
    b2 = jax.random.uniform(k4, (1,), jnp.float32,
                            minval=-bound2, maxval=bound2)
    return w1, b1, w2, b2


def _reference(x, w1, b1, w2, b2):
    return jnp.maximum(x @ w1 + b1, 0.0) @ w2.T + b2[None, :]


if __name__ == "__main__":
    input_dim, hidden_dim = 32, 64
    key = jax.random.PRNGKey(0)
    kx, kp, kx2 = jax.random.split(key, 3)
    w1, b1, w2, b2 = init_params(kp, input_dim, hidden_dim)

    # Small single-tile case (grid = 1, block equals full output row).
    batch = 8
    x = jax.random.normal(kx, (batch, input_dim), jnp.float32)
    out = jax.block_until_ready(two_layer_regression(x, w1, b1, w2, b2))
    ref = _reference(x, w1, b1, w2, b2)
    assert out.shape == (batch, 1)
    assert jnp.allclose(out, ref, atol=1e-4, rtol=1e-4)

    # Multi-tile case with a ragged last block (grid > 1, no jnp.pad of x,
    # exercises the streamed-x / resident-weight / lane-dense-output path).
    batch2 = 300
    x2 = jax.random.normal(kx2, (batch2, input_dim), jnp.float32)
    out2 = jax.block_until_ready(
        two_layer_regression(x2, w1, b1, w2, b2, block_rows=128))
    ref2 = _reference(x2, w1, b1, w2, b2)
    assert out2.shape == (batch2, 1)
    assert jnp.allclose(out2, ref2, atol=1e-4, rtol=1e-4)

    print("KERNEL_OK")
</pallas_src>

<mosaic_0001>
module attributes {stable_mosaic.version = 11 : i64} {
  func.func @_mlp_kernel(%arg0: i32, %arg1: memref<8x32xf32, #tpu.memory_space<vmem>>, %arg2: memref<32x64xf32, #tpu.memory_space<vmem>>, %arg3: memref<1x64xf32, #tpu.memory_space<vmem>>, %arg4: memref<1x64xf32, #tpu.memory_space<vmem>>, %arg5: memref<1xf32, #tpu.memory_space<smem>>, %arg6: memref<1x8xf32, #tpu.memory_space<vmem>>) attributes {dimension_semantics = [#tpu.dimension_semantics<parallel>], iteration_bounds = array<i64: 1>, scalar_prefetch = 0 : i64, scratch_operands = 0 : i64, tpu.core_type = #tpu.core_type<tc>, window_params = [{transform_indices = @transform_0, window_bounds = array<i64: 8, 32>}, {pipeline_mode = #tpu.pipeline_mode<synchronous>, transform_indices = @transform_1, window_bounds = array<i64: 32, 64>}, {pipeline_mode = #tpu.pipeline_mode<synchronous>, transform_indices = @transform_2, window_bounds = array<i64: 1, 64>}, {pipeline_mode = #tpu.pipeline_mode<synchronous>, transform_indices = @transform_3, window_bounds = array<i64: 1, 64>}, {transform_indices = @transform_4, window_bounds = array<i64: 1>}, {transform_indices = @transform_5, window_bounds = array<i64: 1, 8>}]} {
    %c0 = arith.constant 0 : index
    %c0_0 = arith.constant 0 : index
    %0 = vector.load %arg1[%c0, %c0_0] : memref<8x32xf32, #tpu.memory_space<vmem>>, vector<8x32xf32>
    %c0_1 = arith.constant 0 : index
    %c0_2 = arith.constant 0 : index
    %1 = vector.load %arg2[%c0_1, %c0_2] : memref<32x64xf32, #tpu.memory_space<vmem>>, vector<32x64xf32>
    %cst = arith.constant dense<0.000000e+00> : vector<8x64xf32>
    %2 = tpu.matmul %0, %1, %cst {dimension_numbers = #tpu.dot_dimension_numbers<[1], [0], [0], [1], [0, 0, 1, 1], [], []>} : vector<8x32xf32>, vector<32x64xf32>, vector<8x64xf32> -> vector<8x64xf32>
    %c0_3 = arith.constant 0 : index
    %c0_4 = arith.constant 0 : index
    %3 = vector.load %arg3[%c0_3, %c0_4] : memref<1x64xf32, #tpu.memory_space<vmem>>, vector<1x64xf32>
    %4 = vector.broadcast %3 : vector<1x64xf32> to vector<8x64xf32>
    %5 = arith.addf %2, %4 : vector<8x64xf32>
    %cst_5 = arith.constant 0.000000e+00 : f32
    %6 = vector.broadcast %cst_5 : f32 to vector<8x64xf32>
    %7 = arith.maximumf %5, %6 : vector<8x64xf32>
    %c0_6 = arith.constant 0 : index
    %c0_7 = arith.constant 0 : index
    %8 = vector.load %arg4[%c0_6, %c0_7] : memref<1x64xf32, #tpu.memory_space<vmem>>, vector<1x64xf32>
    %cst_8 = arith.constant dense<0.000000e+00> : vector<1x8xf32>
    %9 = tpu.matmul %8, %7, %cst_8 {dimension_numbers = #tpu.dot_dimension_numbers<[1], [1], [0], [0], [0, 0, 1, 0], [], []>} : vector<1x64xf32>, vector<8x64xf32>, vector<1x8xf32> -> vector<1x8xf32>
    %c0_9 = arith.constant 0 : index
    %10 = memref.load %arg5[%c0_9] : memref<1xf32, #tpu.memory_space<smem>>
    %11 = vector.broadcast %10 : f32 to vector<1x8xf32>
    %12 = arith.addf %9, %11 : vector<1x8xf32>
    %c0_10 = arith.constant 0 : index
    %c0_11 = arith.constant 0 : index
    %13 = vector.load %arg6[%c0_10, %c0_11] : memref<1x8xf32, #tpu.memory_space<vmem>>, vector<1x8xf32>
    tpu.vector_store %arg6[%c0_10, %c0_11], %12 {strides = array<i32>} : memref<1x8xf32, #tpu.memory_space<vmem>>, vector<1x8xf32>,
    return
  }
  func.func @transform_0(%arg0: i32) -> (i32, i32) {
    %c0_i32 = arith.constant 0 : i32
    %c0_i32_0 = arith.constant 0 : i32
    return %arg0, %c0_i32 : i32, i32
  }
  func.func @transform_1(%arg0: i32) -> (i32, i32) {
    %c0_i32 = arith.constant 0 : i32
    %c0_i32_0 = arith.constant 0 : i32
    %c0_i32_1 = arith.constant 0 : i32
    return %c0_i32, %c0_i32_0 : i32, i32
  }
  func.func @transform_2(%arg0: i32) -> (i32, i32) {
    %c0_i32 = arith.constant 0 : i32
    %c0_i32_0 = arith.constant 0 : i32
    %c0_i32_1 = arith.constant 0 : i32
    return %c0_i32, %c0_i32_0 : i32, i32
  }
  func.func @transform_3(%arg0: i32) -> (i32, i32) {
    %c0_i32 = arith.constant 0 : i32
    %c0_i32_0 = arith.constant 0 : i32
    %c0_i32_1 = arith.constant 0 : i32
    return %c0_i32, %c0_i32_0 : i32, i32
  }
  func.func @transform_4(%arg0: i32) -> i32 {
    %c0_i32 = arith.constant 0 : i32
    %c0_i32_0 = arith.constant 0 : i32
    return %c0_i32 : i32
  }
  func.func @transform_5(%arg0: i32) -> (i32, i32) {
    %c0_i32 = arith.constant 0 : i32
    %c0_i32_0 = arith.constant 0 : i32
    return %c0_i32, %arg0 : i32, i32
  }
}

</mosaic_0001>

<bundles_post_ra>
// kernel: tpu_custom_call.1
= control target key start
LH: loop header
LB: loop body
LE: loop exit
PB: predicated region body
PF: predicated region fallthrough
CT: control target
= control target key end

     0   :  { %11 = vsyncpa [#allocation4], 0  ;;  %s436_s0 = inlined_call_operand.hbm [shape: f32[8,32], index: 0, kind: input, shape index: {}]   ;;  %s437_s1 = inlined_call_operand.hbm [shape: f32[32,64], index: 1, kind: input, shape index: {}]   ;;  %s438_s2 = inlined_call_operand.vmem [shape: f32[1,64], index: 2, kind: input, shape index: {}]   ;;  %s439_s3 = inlined_call_operand.vmem [shape: f32[1,64], index: 3, kind: input, shape index: {}]   ;;  %s440_s4 = inlined_call_operand.<no memory space> [shape: f32[1], index: 4, kind: input, shape index: {}]   ;;  %s441_s5 = inlined_call_operand.hbm [shape: f32[1,8], index: 5, kind: output, shape index: {}]  }
   0x1   :  { %12 = vsyncpa [#allocation7], 0 }
   0x2   :  { %13 = vsyncpa [#allocation5], 0  ;;  %s346_s18 = smov [#allocation3]   ;;  %s347_s20 = smov [#allocation6]  }
   0x3   :  { %s20_s19 = sshll.u32 %s346_s18, 4  ;;  %s29_s21 = sshll.u32 %s347_s20, 4  ;;  %s21_s19 = int_to_ptr.vmem [resolvable:$true] %s20_s19  ;;  %s384_s21 = int_to_ptr.vmem [resolvable:$true] %s29_s21 }
   0x4   :  { %s274_s24 = scalar_lea.hbm %s436_s0, 128 }
   0x5   :  { %p275_p0 = scmp.ne.s32.totalorder %s436_s0, %s274_s24  ;;  %p278_p1 = scmp.lt.u32.totalorder %s274_s24, %s436_s0 }
   0x7   :  { %p280_p2 = pnand %p278_p1, %p275_p0 }
   0x9   :  { %283 = shalt.err (!%p280_p2)
}
   0xa   :  { %s284_s29 = scalar_lea.vmem %s21_s19, 128  ;;  %p289_p4 = scmp.lt.s32.totalorder %s21_s19, %s21_s19 }
   0xb   :  { %p285_p3 = scmp.ne.s32.totalorder %s21_s19, %s284_s29  ;;  %p290_p5 = scmp.lt.s32.totalorder %s284_s29, %s284_s29 }
   0xd   :  { %p291_p6 = por %p290_p5, %p289_p4 }
   0xf   :  { %p292_p7 = pnand %p291_p6, %p285_p3 }
  0x11   :  { %295 = shalt.err (!%p292_p7)
}
  0x12   :  { %23 = dma.hbm_to_vmem [thread:$0]  %s436_s0, 128, %s21_s19, [#allocation4]  }
  0x13   :  { %s296_s9 = scalar_lea.hbm %s437_s1, 512 }
  0x14   :  { %p297_p8 = scmp.ne.s32.totalorder %s437_s1, %s296_s9  ;;  %p300_p9 = scmp.lt.u32.totalorder %s296_s9, %s437_s1 }
  0x16   :  { %p302_p10 = pnand %p300_p9, %p297_p8 }
  0x18   :  { %305 = shalt.err (!%p302_p10)
}
  0x19   :  { %s306_s14 = scalar_lea.vmem %s384_s21, 512  ;;  %p311_p12 = scmp.lt.s32.totalorder %s384_s21, %s384_s21 }
  0x1a   :  { %p307_p11 = scmp.ne.s32.totalorder %s384_s21, %s306_s14  ;;  %p312_p13 = scmp.lt.s32.totalorder %s306_s14, %s306_s14 }
  0x1c   :  { %p313_p0 = por %p312_p13, %p311_p12 }
  0x1e   :  { %p314_p1 = pnand %p313_p0, %p307_p11 }
  0x20   :  { %317 = shalt.err (!%p314_p1)
}
  0x21   :  { %s348_s0 = smov 128   ;;  %s349_s15 = smov 8  }
  0x22   :  { %35 = dma.hbm_to_vmem [thread:$0]  %s437_s1, 512, %s384_s21, [#allocation7], %s348_s0, %s348_s0, %s349_s15  }
  0x23   :  { %340 = dma.done.wait [#allocation4], 128  }
  0x24   :  { %341 = vsyncadd [#allocation4], 4294967168 }
  0x25   :  { %342 = dma.done.wait [#allocation7], 512  }
  0x26   :  { %343 = vsyncadd [#allocation7], 4294966784  ;;  %v350_v0 = vmov 0.0|0.0   ;;  %vm351_vm0 = vmmov 0   ;;  %v352_v1 = vmov 0.0   ;;  %v49_v2 = vld [vmem:[#allocation6] sm:$0xff]  ;;  %v137_v15 = vstv %s440_s4 }
  0x27   :  { %260 = vmatprep.subr.bf16.mxu0 %v350_v0  ;;  %252 = vmatprep.mubr.msk.f32.mxu0 %vm351_vm0, %v352_v1  ;;  %v50_v3 = vld [vmem:[#allocation6 + $0x8] sm:$0xff]  ;;  %v51_v4 = vld [vmem:[#allocation6 + $0x10] sm:$0xff]  ;;  %v52_v6 = vld [vmem:[#allocation6 + $0x18] sm:$0xff]  ;;  %vm60_vm1 = vcmask 261120   ;;  %vm138_vm2 = vcmask 523264   ;;  %s353_s23 = smov [#allocation8]  }
  0x28   :  { %255 = vmatprep.subr.mxu1 %v352_v1  ;;  %257 = vmatprep.mubr.msk.f32.mxu1 %vm351_vm0, %v352_v1  ;;  %v261_v5 = vpack.c.bf16 %v50_v3, %v49_v2  ;;  %v264_v7 = vpack.c.bf16 %v52_v6, %v51_v4  ;;  %v48_v8 = vld [vmem:[#allocation3] sm:$0xff]  ;;  %s223_s24 = sshll.u32 %s353_s23, 4  ;;  %vm215_vm3 = vcmask 57344   ;;  %s224_s24 = int_to_ptr.vmem [resolvable:$true] %s223_s24 }
  0x29   :  { %v233_v9 = vld [vmem:[%s438_s2] ss:$0 sm:$0xff]  ;;  %s318_s2 = scalar_lea.vmem %s224_s24, 16  ;;  %s322_s25 = scalar_lea.vmem %s224_s24, 32 }
  0x2a   :  { %262 = vmatpush3.bf16.msra.mxu0 %v261_v5  ;;  %v135_v14 = vld [vmem:[%s439_s3] sm:$0x1]  ;;  %p319_p2 = scmp.ne.s32.totalorder %s224_s24, %s318_s2  ;;  %p323_p3 = scmp.lt.s32.totalorder %s224_s24, %s224_s24 }
  0x2b   :  { %263 = vmatprep.subr.bf16.mxu0 %v350_v0  ;;  %p324_p4 = scmp.lt.s32.totalorder %s322_s25, %s318_s2 }
  0x2d   :  { %p325_p5 = por %p324_p4, %p323_p3 }
  0x2e   :  { %265 = vmatpush3.bf16.msra.mxu0 %v264_v7 }
  0x2f   :  { %p326_p6 = pnand %p325_p5, %p319_p2 }
  0x31   :  { %253 = vmatmul.mubr.msk.f32.vlgmr.msra.gmra.mrb[0].mxu0 %vm60_vm1, %v48_v8 }
 0x104   :  { %v130_v10 = vpop.f32.mrb[0].mxu0 }
 0x105   :  { %v131_v11 = vadd.f32 %v233_v9, %v130_v10  ;;  %v254_v12 = vpop.f32.mrb[1].mxu0 }
 0x107   :  { %v134_v13 = vmax.f32 %v131_v11, 0.0 }
 0x109   :  { %256 = vmatpush3.xpose.msk.msra.mxu1 %vm138_vm2, %v134_v13 }
 0x10c   :  { %258 = vmatmul.mubr.msk.f32.vlgmr.msra.gmra.mrb[0].mxu1 %vm138_vm2, %v135_v14 }
 0x1df   :  { %v211_v16 = vpop.f32.mrb[0].mxu1 }
 0x1e0   :  { %v212_v17 = vadd.f32 %v211_v16, %v137_v15  ;;  %v259_v18 = vpop.f32.mrb[1].mxu1 }
 0x1e2   :  { %216 = vst.msk [vmem:[#allocation8] sm:$0x1] %vm215_vm3, %v212_v17 }
 0x1e3   :  { %329 = shalt.err (!%p326_p6)
}
 0x1e4   :  { %s330_s4 = scalar_lea.hbm %s441_s5, 16 }
 0x1e5   :  { %p331_p7 = scmp.ne.s32.totalorder %s441_s5, %s330_s4  ;;  %p334_p8 = scmp.lt.u32.totalorder %s330_s4, %s441_s5 }
 0x1e7   :  { %p336_p9 = pnand %p334_p8, %p331_p7 }
 0x1e9   :  { %339 = shalt.err (!%p336_p9)
}
 0x1ea   :  { %226 = dma.vmem_to_hbm [thread:$0]  %s224_s24, 16, %s441_s5, [#allocation5]  }
 0x1eb   :  { %344 = dma.done.wait [#allocation5], 16  }
 0x1ec   :  { %345 = vsyncadd [#allocation5], 4294967280 }
 0x1ed   :  { %230 = vsyncpa [#allocation4], 1 }
 0x1ee   :  { %231 = vsyncpa [#allocation7], 1 }
 0x1ef   :  { %232 = vsyncpa [#allocation5], 1 }

</bundles_post_ra>
